<compile_context>
chip_gen: v5e
topology: v5e:2x2
jax: 0.10.0
libtpu: 0.0.40
codegen_flags: <defaults>
</compile_context>

<pallas_src>
import jax
import jax.numpy as jnp
from jax.experimental import pallas as pl
from jax.experimental.pallas import tpu as pltpu

HP = 128          # padded hidden width  (lane-dense)
AP = 128          # padded action width  (lane-dense output)
NEG = -1e30       # bias for padded logit lanes -> softmax prob exactly 0


def _round_up(n, m):
    return ((n + m - 1) // m) * m


def policy_kernel(x_ref, w1_ref, w2a_ref, b_ref, o_ref):
    # in-kernel bf16 cast of the activations (MXU-native operands, free VPU work)
    x = x_ref[...].astype(jnp.bfloat16)
    # fc1 + relu  (bf16 operands, f32 MXU accumulation)
    h1 = jnp.dot(x, w1_ref[...], preferred_element_type=jnp.float32)
    h1 = jnp.maximum(h1 + b_ref[0:1, :], 0.0)
    # fc2 + relu  (first half of the packed [HP, 2*HP] weight slab)
    h2 = jnp.dot(h1.astype(jnp.bfloat16), w2a_ref[:, :HP],
                 preferred_element_type=jnp.float32)
    h2 = jnp.maximum(h2 + b_ref[1:2, :], 0.0)
    # actor head (second half of the slab); padded lanes get -1e30 bias
    logits = jnp.dot(h2.astype(jnp.bfloat16), w2a_ref[:, HP:],
                     preferred_element_type=jnp.float32)
    logits = logits + b_ref[2:3, :]
    # softmax over dim=1 (action axis = lane axis), lane-dense to 128
    m = jnp.max(logits, axis=-1, keepdims=True)
    e = jnp.exp(logits - m)
    denom = jnp.sum(e, axis=-1, keepdims=True)
    # exact f32 divide: rows sum to 1 within f32 rounding (PPO ratios safe)
    o_ref[...] = (e / denom).astype(o_ref.dtype)


def pack_params(params):
    """One-time packing: pad to lane-dense widths, fuse slabs, cast to bf16."""
    w1, b1, w2, b2, wa, ba = params      # [in,out] weights, [1,out] biases
    S, H = w1.shape
    A = wa.shape[1]
    f32, bf16 = jnp.float32, jnp.bfloat16

    # zero-pad hidden (64 -> HP) and actions (A -> AP)
    w1p = jnp.zeros((S, HP), f32).at[:, :H].set(w1)
    w2p = jnp.zeros((HP, HP), f32).at[:H, :H].set(w2)
    wap = jnp.zeros((HP, AP), f32).at[:H, :A].set(wa)
    # fc2 and actor weights share the hidden input dim -> one DMA, one slab
    w2a = jnp.concatenate([w2p, wap], axis=1).astype(bf16)   # [HP, 2*HP]

    # all three biases in one [8, 128] f32 slab (rows 0/1/2; rest unused)
    # keep b_pack in f32: the -1e30 mask must NOT be folded into bf16
    b_pack = jnp.zeros((8, HP), f32)
    b_pack = b_pack.at[0, :H].set(b1[0])
    b_pack = b_pack.at[1, :H].set(b2[0])
    b_pack = b_pack.at[2, :].set(jnp.full((AP,), NEG, f32))
    b_pack = b_pack.at[2, :A].set(ba[0])

    return (w1p.astype(bf16), w2a, b_pack, A)


def policy_forward(x, packed, *, block_b=512):
    """x: [B, state_dim] float32 -> probs: [B, action_dim] float32."""
    w1p, w2a, b_pack, action_dim = packed
    B, S = x.shape

    # batch tile: multiple of 8 sublanes, up to block_b rows per grid step
    bb = min(block_b, _round_up(B, 8))
    Bp = _round_up(B, bb)
    if Bp != B:
        x = jnp.pad(x, ((0, Bp - B), (0, 0)))
    grid = (Bp // bb,)

    cost = pl.CostEstimate(
        flops=2 * Bp * (S * HP + HP * HP + HP * AP),
        transcendentals=Bp * AP,
        bytes_accessed=(Bp * S * 4                 # x (f32 in)
                        + S * HP * 2               # w1 (bf16)
                        + HP * 2 * HP * 2          # w2+actor slab (bf16)
                        + 8 * HP * 4               # bias pack (f32)
                        + Bp * AP * 4),            # output (f32)
    )

    out = pl.pallas_call(
        policy_kernel,
        out_shape=jax.ShapeDtypeStruct((Bp, AP), jnp.float32),
        grid=grid,
        in_specs=[
            # streamed per grid step
            pl.BlockSpec((bb, S), lambda i: (i, 0)),
            # weights / biases: constant index_map -> DMA'd once, VMEM-resident
            pl.BlockSpec((S, HP), lambda i: (0, 0)),
            pl.BlockSpec((HP, 2 * HP), lambda i: (0, 0)),
            pl.BlockSpec((8, HP), lambda i: (0, 0)),
        ],
        out_specs=pl.BlockSpec((bb, AP), lambda i: (i, 0)),
        compiler_params=pltpu.CompilerParams(
            dimension_semantics=("parallel",)),
        cost_estimate=cost,
    )(x, w1p, w2a, b_pack)

    # Downstream consumers that tolerate the padded [B, 128] slab should use
    # `out[:B]` directly (padded lanes are exactly 0) and skip this slice.
    return out[:B, :action_dim]


def init_params(key, state_dim, action_dim, hidden=64):
    ks = jax.random.split(key, 6)
    scale = 0.1
    w1 = scale * jax.random.normal(ks[0], (state_dim, hidden), jnp.float32)
    b1 = scale * jax.random.normal(ks[1], (1, hidden), jnp.float32)
    w2 = scale * jax.random.normal(ks[2], (hidden, hidden), jnp.float32)
    b2 = scale * jax.random.normal(ks[3], (1, hidden), jnp.float32)
    wa = scale * jax.random.normal(ks[4], (hidden, action_dim), jnp.float32)
    ba = scale * jax.random.normal(ks[5], (1, action_dim), jnp.float32)
    return (w1, b1, w2, b2, wa, ba)


def policy_forward_ref(x, params):
    """Full-f32 reference matching the PyTorch forward."""
    w1, b1, w2, b2, wa, ba = params
    h1 = jnp.maximum(x @ w1 + b1, 0.0)
    h2 = jnp.maximum(h1 @ w2 + b2, 0.0)
    logits = h2 @ wa + ba
    return jax.nn.softmax(logits, axis=1)


if __name__ == "__main__":
    key = jax.random.PRNGKey(0)
    k_x, k_p = jax.random.split(key)

    batch = 8
    state_dim = 32
    action_dim = 8

    x = jax.random.normal(k_x, (batch, state_dim), jnp.float32)
    params = init_params(k_p, state_dim, action_dim)
    packed = pack_params(params)

    probs = jax.block_until_ready(policy_forward(x, packed))
    ref = jax.block_until_ready(policy_forward_ref(x, params))

    assert probs.shape == (batch, action_dim)
    # rows are exact probability distributions (exact f32 divide)
    assert jnp.allclose(jnp.sum(probs, axis=1), 1.0, atol=1e-5), \
        float(jnp.max(jnp.abs(jnp.sum(probs, axis=1) - 1.0)))
    # matches the f32 reference within bf16-operand tolerance
    assert jnp.allclose(probs, ref, atol=1e-2), \
        float(jnp.max(jnp.abs(probs - ref)))

    print("KERNEL_OK")
</pallas_src>

<mosaic_0001>
module attributes {stable_mosaic.version = 11 : i64} {
  func.func @policy_kernel(%arg0: i32, %arg1: memref<8x32xf32, #tpu.memory_space<vmem>>, %arg2: memref<32x128xbf16, #tpu.memory_space<vmem>>, %arg3: memref<128x256xbf16, #tpu.memory_space<vmem>>, %arg4: memref<8x128xf32, #tpu.memory_space<vmem>>, %arg5: memref<8x128xf32, #tpu.memory_space<vmem>>) attributes {dimension_semantics = [#tpu.dimension_semantics<parallel>], iteration_bounds = array<i64: 1>, scalar_prefetch = 0 : i64, scratch_operands = 0 : i64, tpu.core_type = #tpu.core_type<tc>, window_params = [{transform_indices = @transform_0, window_bounds = array<i64: 8, 32>}, {pipeline_mode = #tpu.pipeline_mode<synchronous>, transform_indices = @transform_1, window_bounds = array<i64: 32, 128>}, {pipeline_mode = #tpu.pipeline_mode<synchronous>, transform_indices = @transform_2, window_bounds = array<i64: 128, 256>}, {pipeline_mode = #tpu.pipeline_mode<synchronous>, transform_indices = @transform_3, window_bounds = array<i64: 8, 128>}, {transform_indices = @transform_4, window_bounds = array<i64: 8, 128>}]} {
    %c0 = arith.constant 0 : index
    %c0_0 = arith.constant 0 : index
    %0 = vector.load %arg1[%c0, %c0_0] : memref<8x32xf32, #tpu.memory_space<vmem>>, vector<8x32xf32>
    %1 = arith.truncf %0 : vector<8x32xf32> to vector<8x32xbf16>
    %c0_1 = arith.constant 0 : index
    %c0_2 = arith.constant 0 : index
    %2 = vector.load %arg2[%c0_1, %c0_2] : memref<32x128xbf16, #tpu.memory_space<vmem>>, vector<32x128xbf16>
    %cst = arith.constant dense<0.000000e+00> : vector<8x128xf32>
    %3 = tpu.matmul %1, %2, %cst {dimension_numbers = #tpu.dot_dimension_numbers<[1], [0], [0], [1], [0, 0, 1, 1], [], []>} : vector<8x32xbf16>, vector<32x128xbf16>, vector<8x128xf32> -> vector<8x128xf32>
    %c0_3 = arith.constant 0 : index
    %c0_4 = arith.constant 0 : index
    %4 = vector.load %arg4[%c0_3, %c0_4] : memref<8x128xf32, #tpu.memory_space<vmem>>, vector<1x128xf32>
    %5 = vector.broadcast %4 : vector<1x128xf32> to vector<8x128xf32>
    %6 = arith.addf %3, %5 : vector<8x128xf32>
    %cst_5 = arith.constant 0.000000e+00 : f32
    %7 = vector.broadcast %cst_5 : f32 to vector<8x128xf32>
    %8 = arith.maximumf %6, %7 : vector<8x128xf32>
    %9 = arith.truncf %8 : vector<8x128xf32> to vector<8x128xbf16>
    %c0_6 = arith.constant 0 : index
    %c0_7 = arith.constant 0 : index
    %10 = vector.load %arg3[%c0_6, %c0_7] : memref<128x256xbf16, #tpu.memory_space<vmem>>, vector<128x128xbf16>
    %cst_8 = arith.constant dense<0.000000e+00> : vector<8x128xf32>
    %11 = tpu.matmul %9, %10, %cst_8 {dimension_numbers = #tpu.dot_dimension_numbers<[1], [0], [0], [1], [0, 0, 1, 1], [], []>} : vector<8x128xbf16>, vector<128x128xbf16>, vector<8x128xf32> -> vector<8x128xf32>
    %c1 = arith.constant 1 : index
    %c0_9 = arith.constant 0 : index
    %12 = vector.load %arg4[%c1, %c0_9] : memref<8x128xf32, #tpu.memory_space<vmem>>, vector<1x128xf32>
    %13 = vector.broadcast %12 : vector<1x128xf32> to vector<8x128xf32>
    %14 = arith.addf %11, %13 : vector<8x128xf32>
    %cst_10 = arith.constant 0.000000e+00 : f32
    %15 = vector.broadcast %cst_10 : f32 to vector<8x128xf32>
    %16 = arith.maximumf %14, %15 : vector<8x128xf32>
    %17 = arith.truncf %16 : vector<8x128xf32> to vector<8x128xbf16>
    %c0_11 = arith.constant 0 : index
    %c128 = arith.constant 128 : index
    %18 = vector.load %arg3[%c0_11, %c128] : memref<128x256xbf16, #tpu.memory_space<vmem>>, vector<128x128xbf16>
    %cst_12 = arith.constant dense<0.000000e+00> : vector<8x128xf32>
    %19 = tpu.matmul %17, %18, %cst_12 {dimension_numbers = #tpu.dot_dimension_numbers<[1], [0], [0], [1], [0, 0, 1, 1], [], []>} : vector<8x128xbf16>, vector<128x128xbf16>, vector<8x128xf32> -> vector<8x128xf32>
    %c2 = arith.constant 2 : index
    %c0_13 = arith.constant 0 : index
    %20 = vector.load %arg4[%c2, %c0_13] : memref<8x128xf32, #tpu.memory_space<vmem>>, vector<1x128xf32>
    %21 = vector.broadcast %20 : vector<1x128xf32> to vector<8x128xf32>
    %22 = arith.addf %19, %21 : vector<8x128xf32>
    %cst_14 = arith.constant dense<0xFF800000> : vector<8xf32>
    %23 = vector.multi_reduction <maximumf>, %22, %cst_14 [1] : vector<8x128xf32> to vector<8xf32>
    %24 = vector.shape_cast %23 : vector<8xf32> to vector<8x1xf32>
    %25 = vector.broadcast %24 : vector<8x1xf32> to vector<8x128xf32>
    %26 = arith.subf %22, %25 : vector<8x128xf32>
    %27 = math.exp %26 : vector<8x128xf32>
    %cst_15 = arith.constant dense<0.000000e+00> : vector<8xf32>
    %28 = vector.multi_reduction <add>, %27, %cst_15 [1] : vector<8x128xf32> to vector<8xf32>
    %29 = vector.shape_cast %28 : vector<8xf32> to vector<8x1xf32>
    %30 = vector.broadcast %29 : vector<8x1xf32> to vector<8x128xf32>
    %31 = arith.divf %27, %30 : vector<8x128xf32>
    %c0_16 = arith.constant 0 : index
    %c0_17 = arith.constant 0 : index
    %32 = vector.load %arg5[%c0_16, %c0_17] : memref<8x128xf32, #tpu.memory_space<vmem>>, vector<8x128xf32>
    tpu.vector_store %arg5[%c0_16, %c0_17], %31 {strides = array<i32>} : memref<8x128xf32, #tpu.memory_space<vmem>>, vector<8x128xf32>,
    return
  }
  func.func @transform_0(%arg0: i32) -> (i32, i32) {
    %c0_i32 = arith.constant 0 : i32
    %c0_i32_0 = arith.constant 0 : i32
    return %arg0, %c0_i32 : i32, i32
  }
  func.func @transform_1(%arg0: i32) -> (i32, i32) {
    %c0_i32 = arith.constant 0 : i32
    %c0_i32_0 = arith.constant 0 : i32
    %c0_i32_1 = arith.constant 0 : i32
    return %c0_i32, %c0_i32_0 : i32, i32
  }
  func.func @transform_2(%arg0: i32) -> (i32, i32) {
    %c0_i32 = arith.constant 0 : i32
    %c0_i32_0 = arith.constant 0 : i32
    %c0_i32_1 = arith.constant 0 : i32
    return %c0_i32, %c0_i32_0 : i32, i32
  }
  func.func @transform_3(%arg0: i32) -> (i32, i32) {
    %c0_i32 = arith.constant 0 : i32
    %c0_i32_0 = arith.constant 0 : i32
    %c0_i32_1 = arith.constant 0 : i32
    return %c0_i32, %c0_i32_0 : i32, i32
  }
  func.func @transform_4(%arg0: i32) -> (i32, i32) {
    %c0_i32 = arith.constant 0 : i32
    %c0_i32_0 = arith.constant 0 : i32
    return %arg0, %c0_i32 : i32, i32
  }
}

</mosaic_0001>

<bundles_post_ra>
// kernel: tpu_custom_call.1
= control target key start
LH: loop header
LB: loop body
LE: loop exit
PB: predicated region body
PF: predicated region fallthrough
CT: control target
= control target key end

     0   :  { %9 = vsyncpa [#allocation3], 0  ;;  %s603_s0 = inlined_call_operand.hbm [shape: f32[8,32], index: 0, kind: input, shape index: {}]   ;;  %s604_s1 = inlined_call_operand.hbm [shape: bf16[32,128], index: 1, kind: input, shape index: {}]   ;;  %s605_s2 = inlined_call_operand.hbm [shape: bf16[128,256], index: 2, kind: input, shape index: {}]   ;;  %s606_s3 = inlined_call_operand.hbm [shape: f32[8,128], index: 3, kind: input, shape index: {}]   ;;  %s607_s4 = inlined_call_operand.hbm [shape: f32[8,128], index: 4, kind: output, shape index: {}]  }
   0x1   :  { %10 = vsyncpa [#allocation6], 0 }
   0x2   :  { %11 = vsyncpa [#allocation9], 0  ;;  %s28_s17 = sshll.u32 %s604_s1, 4  ;;  %s29_s17 = int_to_ptr.hbm [resolvable:$true] %s28_s17 }
   0x3   :  { %12 = vsyncpa [#allocation4], 0  ;;  %s554_s18 = smov [#allocation5]   ;;  %s18_s22 = sshll.u32 %s603_s0, 4  ;;  %s19_s22 = int_to_ptr.hbm [resolvable:$true] %s18_s22 }
   0x4   :  { %s30_s19 = sshll.u32 %s554_s18, 4  ;;  %s555_s23 = smov 64   ;;  %s31_s19 = int_to_ptr.vmem [resolvable:$true] %s30_s19 }
   0x5   :  { %s556_s24 = smov 4   ;;  %s557_s25 = smov [#allocation2]  }
   0x6   :  { %36 = dma.hbm_to_vmem [thread:$0]  %s29_s17, 256, %s31_s19, [#allocation6], %s555_s23, %s555_s23, %s556_s24  }
   0x7   :  { %s20_s26 = sshll.u32 %s557_s25, 4  ;;  %s41_s29 = sshll.u32 %s605_s2, 4  ;;  %s21_s26 = int_to_ptr.vmem [resolvable:$true] %s20_s26  ;;  %s42_s29 = int_to_ptr.hbm [resolvable:$true] %s41_s29 }
   0x8   :  { %23 = dma.hbm_to_vmem [thread:$0]  %s19_s22, 128, %s21_s26, [#allocation3]  }
   0x9   :  { %s558_s1 = smov [#allocation7]   ;;  %s55_s0 = sshll.u32 %s606_s3, 4  ;;  %s56_s0 = int_to_ptr.hbm [resolvable:$true] %s55_s0 }
   0xa   :  { %s43_s30 = sshll.u32 %s558_s1, 4  ;;  %s559_s7 = smov 128   ;;  %s44_s30 = int_to_ptr.vmem [resolvable:$true] %s43_s30 }
   0xb   :  { %s560_s8 = smov 8   ;;  %s561_s9 = smov [#allocation8]  }
   0xc   :  { %49 = dma.hbm_to_vmem [thread:$0]  %s42_s29, 2048, %s44_s30, [#allocation6], %s559_s7, %s559_s7, %s560_s8  }
   0xd   :  { %s57_s10 = sshll.u32 %s561_s9, 4  ;;  %s58_s10 = int_to_ptr.vmem [resolvable:$true] %s57_s10 }
   0xe   :  { %60 = dma.hbm_to_vmem [thread:$0]  %s56_s0, 128, %s58_s10, [#allocation9]  }
   0xf   :  { %546 = dma.done.wait [#allocation3], 128  }
  0x10   :  { %547 = vsyncadd [#allocation3], 4294967168 }
  0x11   :  { %548 = dma.done.wait [#allocation6], 2304  }
  0x12   :  { %549 = vsyncadd [#allocation6], 4294964992 }
  0x13   :  { %550 = dma.done.wait [#allocation9], 128  }
  0x14   :  { %551 = vsyncadd [#allocation9], 4294967168  ;;  %v393_v0 = vld [vmem:[#allocation5 + $0x8] sm:$0xff]  ;;  %v358_v1 = vld [vmem:[#allocation7 + $0x70] sm:$0xf]  ;;  %vm98_vm0 = vcmask 261120  }
  0x15   :  { %v401_v2 = vld [vmem:[#allocation7 + $0x74] sm:$0xf0]  ;;  %v354_v3 = vld [vmem:[#allocation7 + $0x60] sm:$0xf]  ;;  %108 = vmatpush.bf16.msra.mxu0 %v393_v0  ;;  %v392_v4 = vld [vmem:[#allocation5] sm:$0xff]  ;;  %s562_s2 = smov [#allocation10]  }
  0x16   :  { %v78_v5 = vld [vmem:[#allocation2] sm:$0xff]  ;;  %v359_v6 = vor.u32 %v401_v2, %v358_v1  ;;  %v350_v9 = vld [vmem:[#allocation7 + $0x50] sm:$0xf]  ;;  %v399_v11 = vld [vmem:[#allocation7 + $0x54] sm:$0xf0]  ;;  %s305_s3 = sshll.u32 %s562_s2, 4  ;;  %s306_s3 = int_to_ptr.vmem [resolvable:$true] %s305_s3 }
  0x17   :  { %v400_v7 = vld [vmem:[#allocation7 + $0x64] sm:$0xf0]  ;;  %v79_v10 = vpack.c.bf16 %v78_v5, %v78_v5  ;;  %v351_v12 = vor.u32 %v399_v11, %v350_v9  ;;  %v346_v13 = vld [vmem:[#allocation7 + $0x40] sm:$0xf]  ;;  %v342_v16 = vld [vmem:[#allocation7 + $0x30] sm:$0xf] }
  0x18   :  { %183 = vmatpush.bf16.msra.mxu1 %v359_v6  ;;  %v355_v8 = vor.u32 %v400_v7, %v354_v3  ;;  %v398_v14 = vld [vmem:[#allocation7 + $0x44] sm:$0xf0]  ;;  %v397_v17 = vld [vmem:[#allocation7 + $0x34] sm:$0xf0]  ;;  %v338_v19 = vld [vmem:[#allocation7 + $0x20] sm:$0xf] }
  0x19   :  { %109 = vmatpush.bf16.msra.mxu0 %v392_v4  ;;  %v347_v15 = vor.u32 %v398_v14, %v346_v13  ;;  %v343_v18 = vor.u32 %v397_v17, %v342_v16  ;;  %v396_v20 = vld [vmem:[#allocation7 + $0x24] sm:$0xf0]  ;;  %v334_v22 = vld [vmem:[#allocation7 + $0x10] sm:$0xf]  ;;  %v395_v23 = vld [vmem:[#allocation7 + $0x14] sm:$0xf0] }
  0x1a   :  { %v339_v21 = vor.u32 %v396_v20, %v338_v19  ;;  %v335_v24 = vor.u32 %v395_v23, %v334_v22  ;;  %v330_v25 = vld [vmem:[#allocation7] sm:$0xf]  ;;  %v394_v26 = vld [vmem:[#allocation7 + $0x4] sm:$0xf0]  ;;  %v390_v28 = vld [vmem:[#allocation7 + $0x74] sm:$0xf] }
  0x1b   :  { %v331_v27 = vor.u32 %v394_v26, %v330_v25  ;;  %v409_v29 = vld [vmem:[#allocation7 + $0x78] sm:$0xf0]  ;;  %v386_v30 = vld [vmem:[#allocation7 + $0x64] sm:$0xf]  ;;  %v408_v32 = vld [vmem:[#allocation7 + $0x68] sm:$0xf0] }
  0x1c   :  { %184 = vmatpush.bf16.msra.mxu1 %v355_v8  ;;  %327 = vmatmul.msk.bf16.vlgmr.msra.gmra.mxu0 %vm98_vm0, %v79_v10  ;;  %v391_v31 = vor.u32 %v409_v29, %v390_v28  ;;  %v387_v33 = vor.u32 %v408_v32, %v386_v30  ;;  %v382_v34 = vld [vmem:[#allocation7 + $0x54] sm:$0xf]  ;;  %v407_v35 = vld [vmem:[#allocation7 + $0x58] sm:$0xf0]  ;;  %v378_v37 = vld [vmem:[#allocation7 + $0x44] sm:$0xf] }
  0x1d   :  { %v383_v36 = vor.u32 %v407_v35, %v382_v34  ;;  %v406_v38 = vld [vmem:[#allocation7 + $0x48] sm:$0xf0]  ;;  %v374_v40 = vld [vmem:[#allocation7 + $0x34] sm:$0xf]  ;;  %v405_v41 = vld [vmem:[#allocation7 + $0x38] sm:$0xf0] }
  0x1e   :  { %264 = vmatpush.bf16.msra.mxu2 %v391_v31  ;;  %v379_v39 = vor.u32 %v406_v38, %v378_v37  ;;  %v375_v42 = vor.u32 %v405_v41, %v374_v40  ;;  %v370_v43 = vld [vmem:[#allocation7 + $0x24] sm:$0xf]  ;;  %v404_v44 = vld [vmem:[#allocation7 + $0x28] sm:$0xf0]  ;;  %v419_v46 = vld [vmem:[#allocation8] ss:$0 sm:$0xff] }
  0x1f   :  { %v371_v45 = vor.u32 %v404_v44, %v370_v43  ;;  %v366_v52 = vld [vmem:[#allocation7 + $0x14] sm:$0xf]  ;;  %v403_v53 = vld [vmem:[#allocation7 + $0x18] sm:$0xf0]  ;;  %v362_v55 = vld [vmem:[#allocation7 + $0x4] sm:$0xf] }
  0x20   :  { %185 = vmatpush.bf16.msra.mxu1 %v351_v12  ;;  %v367_v54 = vor.u32 %v403_v53, %v366_v52  ;;  %v402_v56 = vld [vmem:[#allocation7 + $0x8] sm:$0xf0]  ;;  %v420_v58 = vld [vmem:[#allocation8 + $0x1] ss:$0 sm:$0xff]  ;;  %v421_v0 = vld [vmem:[#allocation8 + $0x2] ss:$0 sm:$0xff] }
  0x21   :  { %v363_v57 = vor.u32 %v402_v56, %v362_v55  ;;  %s307_s13 = sshll.u32 %s607_s4, 4  ;;  %s308_s13 = int_to_ptr.hbm [resolvable:$true] %s307_s13 }
  0x22   :  { %265 = vmatpush.bf16.msra.mxu2 %v387_v33 }
  0x24   :  { %186 = vmatpush.bf16.msra.mxu1 %v347_v15 }
  0x26   :  { %266 = vmatpush.bf16.msra.mxu2 %v383_v36 }
  0x28   :  { %187 = vmatpush.bf16.msra.mxu1 %v343_v18 }
  0x2a   :  { %267 = vmatpush.bf16.msra.mxu2 %v379_v39 }
  0x2c   :  { %188 = vmatpush.bf16.msra.mxu1 %v339_v21 }
  0x2e   :  { %268 = vmatpush.bf16.msra.mxu2 %v375_v42 }
  0x30   :  { %189 = vmatpush.bf16.msra.mxu1 %v335_v24 }
  0x32   :  { %269 = vmatpush.bf16.msra.mxu2 %v371_v45 }
  0x34   :  { %190 = vmatpush.bf16.msra.mxu1 %v331_v27 }
  0x36   :  { %270 = vmatpush.bf16.msra.mxu2 %v367_v54 }
  0x3a   :  { %271 = vmatpush.bf16.msra.mxu2 %v363_v57 }
  0x99   :  { %v111_v47 = vpop.f32.mrf.mxu0 }
  0x9a   :  { %v112_v48 = vadd.f32 %v419_v46, %v111_v47 }
  0x9c   :  { %v115_v49 = vmax.f32 %v112_v48, 0.0 }
  0x9e   :  { %v116_v50 = vpack.c.bf16 %v115_v49, %v115_v49 }
  0xa0   :  { %191 = vmatmul.bf16.vlgmr.msra.gmra.mxu1 %v116_v50 }
  0xa1   :  { %v113_v51 = vpop.f32.mrf.mxu0 }
 0x11d   :  { %v192_v59 = vpop.f32.mrf.mxu1 }
 0x11e   :  { %v193_v60 = vadd.f32 %v420_v58, %v192_v59 }
 0x120   :  { %v196_v61 = vmax.f32 %v193_v60, 0.0 }
 0x122   :  { %v197_v62 = vpack.c.bf16 %v196_v61, %v196_v61 }
 0x124   :  { %272 = vmatmul.bf16.vlgmr.msra.gmra.mxu2 %v197_v62 }
 0x125   :  { %v194_v63 = vpop.f32.mrf.mxu1 }
 0x1a7   :  { %v273_v1 = vpop.f32.mrf.mxu2 }
 0x1a8   :  { %v274_v2 = vadd.f32 %v421_v0, %v273_v1 }
 0x1aa   :  { %277 = vmax.xlane.f32.xlu0 %v274_v2 }
 0x1af   :  { %v275_v3 = vpop.f32.mrf.mxu2 }
 0x21d   :  { %v278_v4 = vpop.xlane.xlu0 %277 }
 0x21e   :  { %v279_v5 = vsub.f32 %v274_v2, %v278_v4 }
 0x220   :  { %v280_v6 = vmul.f32 1.442695, %v279_v5 }
 0x222   :  { %422 = vpow2.f32 %v280_v6 }
 0x228   :  { %v423_v7 = vpop.eup %422 }
 0x229   :  { %282 = vadd.xlane.f32.xlu0 %v423_v7 }
 0x29c   :  { %v283_v8 = vpop.xlane.xlu0 %282 }
 0x29d   :  { %424 = vrcp.f32 %v283_v8  ;;  %v295_v12 = vand.u32 2147483648, %v283_v8  ;;  %v293_v14 = vand.u32 2147483647, %v283_v8  ;;  %vm289_vm2 = vweird.f32 %v283_v8 }
 0x29f   :  { %v296_v16 = vor.u32 1.1754944e-38, %v295_v12  ;;  %vm294_vm4 = vcmp.eq.f32.partialorder %v293_v14, 8.507059e+37 }
 0x2a3   :  { %v425_v9 = vpop.eup %424 }
 0x2a4   :  { %v285_v10 = vmul.f32 %v425_v9, %v283_v8  ;;  %vm290_vm1 = vweird.f32 %v425_v9 }
 0x2a5   :  { %vm291_vm3 = vmor %vm289_vm2, %vm290_vm1 }
 0x2a6   :  { %v286_v11 = vsub.f32 1.0, %v285_v10 }
 0x2a8   :  { %v287_v13 = vmul.f32 %v425_v9, %v286_v11 }
 0x2aa   :  { %v288_v15 = vadd.f32 %v425_v9, %v287_v13 }
 0x2ac   :  { %v292_v17 = vsel %vm291_vm3, %v425_v9, %v288_v15 }
 0x2ad   :  { %v297_v18 = vsel %vm294_vm4, %v296_v16, %v292_v17 }
 0x2ae   :  { %v298_v19 = vmul.f32 %v423_v7, %v297_v18 }
 0x2b0   :  { %299 = vst [vmem:[#allocation10] sm:$0xff] %v298_v19 }
 0x2b1   :  { %310 = dma.vmem_to_hbm [thread:$0]  %s306_s3, 128, %s308_s13, [#allocation4]  }
 0x2b2   :  { %552 = dma.done.wait [#allocation4], 128  }
 0x2b3   :  { %553 = vsyncadd [#allocation4], 4294967168 }
 0x2b4   :  { %315 = vsyncpa [#allocation3], 1 }
 0x2b5   :  { %316 = vsyncpa [#allocation6], 1 }
 0x2b6   :  { %317 = vsyncpa [#allocation9], 1 }
 0x2b7   :  { %318 = vsyncpa [#allocation4], 1 }

</bundles_post_ra>
